<compile_context>
chip_gen: v6e
topology: v6e:2x2x1
jax: 0.10.0
libtpu: 0.0.40
codegen_flags: <defaults>
</compile_context>

<pallas_src>
import jax
import jax.numpy as jnp
from jax.experimental import pallas as pl
from jax.experimental.pallas import tpu as pltpu


_INV_SQRT2 = 0.7071067811865476


def _gelu_exact(x):
    # PyTorch nn.GELU default: 0.5 * x * (1 + erf(x / sqrt(2))), computed in f32.
    # (bf16 / tanh-approx GELU is a v6e/v7x VALU micro-opt; kept exact f32 for
    #  numerical parity with the PyTorch module.)
    return 0.5 * x * (1.0 + jax.lax.erf(x * _INV_SQRT2))


def _round_up(x, m):
    return ((x + m - 1) // m) * m


def mlp_kernel(x_ref,
               w1_ref, b1_ref,
               w2_ref, b2_ref,
               w3_ref, b3_ref,
               w4_ref, b4_ref,
               o_ref):
    # Input tile arrives as f32 straight from HBM; cast to bf16 on the VPU
    # (free slot) right before the first MXU dot.  All dots accumulate in f32.
    x = x_ref[...].astype(jnp.bfloat16)

    # Layer 1: Linear -> (Dropout: identity at eval) -> GELU
    h = jnp.dot(x, w1_ref[...], preferred_element_type=jnp.float32) + b1_ref[...]
    h = _gelu_exact(h)

    # Layer 2: Linear -> (Dropout: identity at eval) -> GELU
    h = jnp.dot(h.astype(jnp.bfloat16), w2_ref[...],
                preferred_element_type=jnp.float32) + b2_ref[...]
    h = _gelu_exact(h)

    # Layer 3: Linear -> GELU
    h = jnp.dot(h.astype(jnp.bfloat16), w3_ref[...],
                preferred_element_type=jnp.float32) + b3_ref[...]
    h = _gelu_exact(h)

    # Layer 4: Linear (logits), lane-dense (padded to 128) f32 store.
    out = jnp.dot(h.astype(jnp.bfloat16), w4_ref[...],
                  preferred_element_type=jnp.float32) + b4_ref[...]
    o_ref[...] = out.astype(o_ref.dtype)


def prepare_params(params):
    """One-time parameter prep, hoisted out of the forward.

    * Output dims padded to multiples of 128 lanes (zero padding is exact:
      padded activations stay exactly 0 through bias+GELU and meet zero weight
      rows in the next layer).
    * Layer-1 in-dim stays at the true input_size so activations need no
      lane padding / materialized copy inside the forward.
    * Weights cast to bf16 (MXU fast path, half the DMA bytes); biases stay f32.
    """
    (w1, b1), (w2, b2), (w3, b3), (w4, b4) = params
    e = w1.shape[0]
    l1_p = _round_up(w1.shape[1], 128)
    l2_p = _round_up(w2.shape[1], 128)
    l3_p = _round_up(w3.shape[1], 128)
    c_p = _round_up(w4.shape[1], 128)

    def pad_w(w, din_p, dout_p):
        return jnp.pad(w, ((0, din_p - w.shape[0]),
                           (0, dout_p - w.shape[1]))).astype(jnp.bfloat16)

    def pad_b(bias, dout_p):
        return jnp.pad(bias, ((0, 0), (0, dout_p - bias.shape[1]))).astype(jnp.float32)

    prepared = (pad_w(w1, e, l1_p), pad_b(b1, l1_p),
                pad_w(w2, l1_p, l2_p), pad_b(b2, l2_p),
                pad_w(w3, l2_p, l3_p), pad_b(b3, l3_p),
                pad_w(w4, l3_p, c_p), pad_b(b4, c_p))
    return prepared, w4.shape[1]


def _choose_row_tiling(rows, tm_target):
    """Pick (tm, steps) bounding padded-row waste and keeping >=2 grid steps.

    Per-grid-step overhead is ~0.35us, so large tiles (512-1024) are preferred;
    tm is shrunk toward rows/steps (rounded to 8 sublanes) so at most a few
    padded rows are processed, and >=2 steps lets the "parallel" row axis shard
    across both v7x TensorCores (harmless on single-TC v5e/v6e).
    """
    steps = max(1, pl.cdiv(rows, tm_target))
    if rows >= 16:
        steps = max(steps, 2)
    tm = _round_up(pl.cdiv(rows, steps), 8)
    return tm, steps


def simple_dense_net_forward(batch, prepared_params, *, num_classes, tm_target=512):
    """batch: (s, b, e) float32. Returns (s, b, num_classes) float32 logits."""
    s, b, e = batch.shape
    w1p, b1p, w2p, b2p, w3p, b3p, w4p, b4p = prepared_params
    assert w1p.shape[0] == e, "prepared params do not match input feature size"
    l1_p, l2_p, l3_p, c_p = w1p.shape[1], w2p.shape[1], w3p.shape[1], w4p.shape[1]

    rows = s * b
    tm, steps = _choose_row_tiling(rows, tm_target)
    rows_p = tm * steps

    x2d = batch.reshape(rows, e)
    if rows_p != rows:
        # Only a handful of padded rows (tm shrunk toward rows/steps); their
        # garbage outputs are dropped by the final slice.
        x2d = jnp.pad(x2d, ((0, rows_p - rows), (0, 0)))

    # Weights/biases: constant index map + single buffer -> DMA'd once and
    # VMEM-resident across all grid steps (no pointless double buffer).
    def resident(shape):
        return pl.BlockSpec(shape, lambda i: (0, 0), pipeline_mode=pl.Buffered(1))

    # Advisory cost estimate so XLA can schedule surrounding ops around us.
    flops = 2 * rows * (e * l1_p + l1_p * l2_p + l2_p * l3_p + l3_p * c_p)
    transcendentals = rows * (l1_p + l2_p + l3_p)  # one erf per hidden activation
    w_bytes = sum(int(p.size) * p.dtype.itemsize for p in prepared_params)
    bytes_accessed = rows_p * e * 4 + w_bytes + rows_p * c_p * 4

    # Generation-aware VMEM cap: ~75% of physical VMEM (~48 MiB on v7x's 64 MiB,
    # ~96 MiB on v5e/v6e's 128 MiB) leaves headroom for compiler scratch/spills.
    try:
        vmem_cap = int(pltpu.get_tpu_info().vmem_capacity_bytes)
    except Exception:  # conservative fallback if HW query is unavailable
        vmem_cap = 64 * 1024 * 1024
    cap = (vmem_cap * 3) // 4

    tile_bytes = 2 * tm * e * 4 + 2 * tm * c_p * 4        # double-buffered x / out tiles
    act_bytes = 3 * tm * max(l1_p, l2_p, l3_p, c_p) * 4   # live f32 activations
    vmem_limit = min(int(1.3 * (w_bytes + tile_bytes + act_bytes)) + (8 << 20), cap)
    # TODO(synk): if resident weights alone exceed `cap` (very wide configs on
    # v7x's 64 MiB), fall back to per-layer K/N tiling with an "arbitrary"
    # reduction grid axis instead of keeping all weights resident.

    out_p = pl.pallas_call(
        mlp_kernel,
        out_shape=jax.ShapeDtypeStruct((rows_p, c_p), jnp.float32),  # pinned f32
        grid=(steps,),
        in_specs=[
            pl.BlockSpec((tm, e), lambda i: (i, 0)),   # f32 rows, cast in-kernel
            resident(w1p.shape), resident(b1p.shape),
            resident(w2p.shape), resident(b2p.shape),
            resident(w3p.shape), resident(b3p.shape),
            resident(w4p.shape), resident(b4p.shape),
        ],
        out_specs=pl.BlockSpec((tm, c_p), lambda i: (i, 0)),
        compiler_params=pltpu.CompilerParams(
            dimension_semantics=("parallel",),
            vmem_limit_bytes=vmem_limit,
        ),
        cost_estimate=pl.CostEstimate(
            flops=flops,
            transcendentals=transcendentals,
            bytes_accessed=bytes_accessed,
        ),
    )(x2d, w1p, b1p, w2p, b2p, w3p, b3p, w4p, b4p)

    # Strip row/lane padding and restore (s, b, num_classes).  (For tiny
    # num_classes the padded-lane writeback + this slice is the residual HBM
    # overhead; emit bf16 logits / fuse into the consumer if it shows in profiles.)
    return out_p[:rows, :num_classes].reshape(s, b, num_classes)


def init_params(key, input_size, lin1_size, lin2_size, lin3_size, num_classes):
    """Deterministic param init; weights stored (in, out), biases (1, out)."""
    dims = [(input_size, lin1_size),
            (lin1_size, lin2_size),
            (lin2_size, lin3_size),
            (lin3_size, num_classes)]
    params = []
    for (din, dout) in dims:
        key, kw, kb = jax.random.split(key, 3)
        bound = 1.0 / jnp.sqrt(float(din))  # PyTorch Linear default init range
        w = jax.random.uniform(kw, (din, dout), jnp.float32, -bound, bound)
        bi = jax.random.uniform(kb, (1, dout), jnp.float32, -bound, bound)
        params.append((w, bi))
    return params


def reference_forward(batch, params):
    """Plain-JAX reference with matching numerics (bf16 operands, f32 accum)."""
    s, b, e = batch.shape
    x = batch.reshape(s * b, e)

    def lin(x, w, bias):
        return jnp.dot(x.astype(jnp.bfloat16), w.astype(jnp.bfloat16),
                       preferred_element_type=jnp.float32) + bias

    (w1, b1), (w2, b2), (w3, b3), (w4, b4) = params
    h = _gelu_exact(lin(x, w1, b1))
    h = _gelu_exact(lin(h, w2, b2))
    h = _gelu_exact(lin(h, w3, b3))
    out = lin(h, w4, b4)
    return out.reshape(s, b, -1)


if __name__ == "__main__":
    # Small shapes consistent with the module's (s, b, e) input convention.
    S, B = 8, 2
    INPUT_SIZE, LIN1, LIN2, LIN3, NUM_CLASSES = 64, 128, 96, 64, 2

    key = jax.random.PRNGKey(0)
    key, kx = jax.random.split(key)
    batch = jax.random.normal(kx, (S, B, INPUT_SIZE), jnp.float32)

    params = init_params(key, INPUT_SIZE, LIN1, LIN2, LIN3, NUM_CLASSES)

    # One-time parameter prep (pad + bf16 cast) hoisted out of the forward.
    prepared, n_classes = prepare_params(params)
    prepared = jax.tree_util.tree_map(jax.device_put, prepared)

    fwd = jax.jit(simple_dense_net_forward,
                  static_argnames=("num_classes", "tm_target"))
    out = fwd(batch, prepared, num_classes=n_classes)
    out = jax.block_until_ready(out)

    ref = reference_forward(batch, params)
    assert out.shape == (S, B, NUM_CLASSES), out.shape
    max_diff = float(jnp.max(jnp.abs(out - ref)))
    assert jnp.allclose(out, ref, atol=1e-2, rtol=1e-2), f"mismatch vs reference: {max_diff}"

    print("KERNEL_OK")
</pallas_src>

<mosaic_0001>
module attributes {stable_mosaic.version = 11 : i64} {
  func.func @mlp_kernel(%arg0: i32, %arg1: memref<8x64xf32, #tpu.memory_space<vmem>>, %arg2: memref<64x128xbf16, #tpu.memory_space<vmem>>, %arg3: memref<1x128xf32, #tpu.memory_space<vmem>>, %arg4: memref<128x128xbf16, #tpu.memory_space<vmem>>, %arg5: memref<1x128xf32, #tpu.memory_space<vmem>>, %arg6: memref<128x128xbf16, #tpu.memory_space<vmem>>, %arg7: memref<1x128xf32, #tpu.memory_space<vmem>>, %arg8: memref<128x128xbf16, #tpu.memory_space<vmem>>, %arg9: memref<1x128xf32, #tpu.memory_space<vmem>>, %arg10: memref<8x128xf32, #tpu.memory_space<vmem>>) attributes {dimension_semantics = [#tpu.dimension_semantics<parallel>], iteration_bounds = array<i64: 2>, scalar_prefetch = 0 : i64, scratch_operands = 0 : i64, tpu.core_type = #tpu.core_type<tc>, window_params = [{transform_indices = @transform_0, window_bounds = array<i64: 8, 64>}, {pipeline_mode = #tpu.pipeline_mode<synchronous>, transform_indices = @transform_1, window_bounds = array<i64: 64, 128>}, {pipeline_mode = #tpu.pipeline_mode<synchronous>, transform_indices = @transform_2, window_bounds = array<i64: 1, 128>}, {pipeline_mode = #tpu.pipeline_mode<synchronous>, transform_indices = @transform_3, window_bounds = array<i64: 128, 128>}, {pipeline_mode = #tpu.pipeline_mode<synchronous>, transform_indices = @transform_4, window_bounds = array<i64: 1, 128>}, {pipeline_mode = #tpu.pipeline_mode<synchronous>, transform_indices = @transform_5, window_bounds = array<i64: 128, 128>}, {pipeline_mode = #tpu.pipeline_mode<synchronous>, transform_indices = @transform_6, window_bounds = array<i64: 1, 128>}, {pipeline_mode = #tpu.pipeline_mode<synchronous>, transform_indices = @transform_7, window_bounds = array<i64: 128, 128>}, {pipeline_mode = #tpu.pipeline_mode<synchronous>, transform_indices = @transform_8, window_bounds = array<i64: 1, 128>}, {transform_indices = @transform_9, window_bounds = array<i64: 8, 128>}]} {
    %c0 = arith.constant 0 : index
    %c0_0 = arith.constant 0 : index
    %0 = vector.load %arg1[%c0, %c0_0] : memref<8x64xf32, #tpu.memory_space<vmem>>, vector<8x64xf32>
    %1 = arith.truncf %0 : vector<8x64xf32> to vector<8x64xbf16>
    %c0_1 = arith.constant 0 : index
    %c0_2 = arith.constant 0 : index
    %2 = vector.load %arg2[%c0_1, %c0_2] : memref<64x128xbf16, #tpu.memory_space<vmem>>, vector<64x128xbf16>
    %cst = arith.constant dense<0.000000e+00> : vector<8x128xf32>
    %3 = tpu.matmul %1, %2, %cst {dimension_numbers = #tpu.dot_dimension_numbers<[1], [0], [0], [1], [0, 0, 1, 1], [], []>} : vector<8x64xbf16>, vector<64x128xbf16>, vector<8x128xf32> -> vector<8x128xf32>
    %c0_3 = arith.constant 0 : index
    %c0_4 = arith.constant 0 : index
    %4 = vector.load %arg3[%c0_3, %c0_4] : memref<1x128xf32, #tpu.memory_space<vmem>>, vector<1x128xf32>
    %5 = vector.broadcast %4 : vector<1x128xf32> to vector<8x128xf32>
    %6 = arith.addf %3, %5 : vector<8x128xf32>
    %cst_5 = arith.constant 5.000000e-01 : f32
    %7 = vector.broadcast %cst_5 : f32 to vector<8x128xf32>
    %8 = arith.mulf %7, %6 : vector<8x128xf32>
    %cst_6 = arith.constant 0.707106769 : f32
    %9 = vector.broadcast %cst_6 : f32 to vector<8x128xf32>
    %10 = arith.mulf %6, %9 : vector<8x128xf32>
    %11 = math.erf %10 : vector<8x128xf32>
    %cst_7 = arith.constant 1.000000e+00 : f32
    %12 = vector.broadcast %cst_7 : f32 to vector<8x128xf32>
    %13 = arith.addf %12, %11 : vector<8x128xf32>
    %14 = arith.mulf %8, %13 : vector<8x128xf32>
    %15 = arith.truncf %14 : vector<8x128xf32> to vector<8x128xbf16>
    %c0_8 = arith.constant 0 : index
    %c0_9 = arith.constant 0 : index
    %16 = vector.load %arg4[%c0_8, %c0_9] : memref<128x128xbf16, #tpu.memory_space<vmem>>, vector<128x128xbf16>
    %cst_10 = arith.constant dense<0.000000e+00> : vector<8x128xf32>
    %17 = tpu.matmul %15, %16, %cst_10 {dimension_numbers = #tpu.dot_dimension_numbers<[1], [0], [0], [1], [0, 0, 1, 1], [], []>} : vector<8x128xbf16>, vector<128x128xbf16>, vector<8x128xf32> -> vector<8x128xf32>
    %c0_11 = arith.constant 0 : index
    %c0_12 = arith.constant 0 : index
    %18 = vector.load %arg5[%c0_11, %c0_12] : memref<1x128xf32, #tpu.memory_space<vmem>>, vector<1x128xf32>
    %19 = vector.broadcast %18 : vector<1x128xf32> to vector<8x128xf32>
    %20 = arith.addf %17, %19 : vector<8x128xf32>
    %cst_13 = arith.constant 5.000000e-01 : f32
    %21 = vector.broadcast %cst_13 : f32 to vector<8x128xf32>
    %22 = arith.mulf %21, %20 : vector<8x128xf32>
    %cst_14 = arith.constant 0.707106769 : f32
    %23 = vector.broadcast %cst_14 : f32 to vector<8x128xf32>
    %24 = arith.mulf %20, %23 : vector<8x128xf32>
    %25 = math.erf %24 : vector<8x128xf32>
    %cst_15 = arith.constant 1.000000e+00 : f32
    %26 = vector.broadcast %cst_15 : f32 to vector<8x128xf32>
    %27 = arith.addf %26, %25 : vector<8x128xf32>
    %28 = arith.mulf %22, %27 : vector<8x128xf32>
    %29 = arith.truncf %28 : vector<8x128xf32> to vector<8x128xbf16>
    %c0_16 = arith.constant 0 : index
    %c0_17 = arith.constant 0 : index
    %30 = vector.load %arg6[%c0_16, %c0_17] : memref<128x128xbf16, #tpu.memory_space<vmem>>, vector<128x128xbf16>
    %cst_18 = arith.constant dense<0.000000e+00> : vector<8x128xf32>
    %31 = tpu.matmul %29, %30, %cst_18 {dimension_numbers = #tpu.dot_dimension_numbers<[1], [0], [0], [1], [0, 0, 1, 1], [], []>} : vector<8x128xbf16>, vector<128x128xbf16>, vector<8x128xf32> -> vector<8x128xf32>
    %c0_19 = arith.constant 0 : index
    %c0_20 = arith.constant 0 : index
    %32 = vector.load %arg7[%c0_19, %c0_20] : memref<1x128xf32, #tpu.memory_space<vmem>>, vector<1x128xf32>
    %33 = vector.broadcast %32 : vector<1x128xf32> to vector<8x128xf32>
    %34 = arith.addf %31, %33 : vector<8x128xf32>
    %cst_21 = arith.constant 5.000000e-01 : f32
    %35 = vector.broadcast %cst_21 : f32 to vector<8x128xf32>
    %36 = arith.mulf %35, %34 : vector<8x128xf32>
    %cst_22 = arith.constant 0.707106769 : f32
    %37 = vector.broadcast %cst_22 : f32 to vector<8x128xf32>
    %38 = arith.mulf %34, %37 : vector<8x128xf32>
    %39 = math.erf %38 : vector<8x128xf32>
    %cst_23 = arith.constant 1.000000e+00 : f32
    %40 = vector.broadcast %cst_23 : f32 to vector<8x128xf32>
    %41 = arith.addf %40, %39 : vector<8x128xf32>
    %42 = arith.mulf %36, %41 : vector<8x128xf32>
    %43 = arith.truncf %42 : vector<8x128xf32> to vector<8x128xbf16>
    %c0_24 = arith.constant 0 : index
    %c0_25 = arith.constant 0 : index
    %44 = vector.load %arg8[%c0_24, %c0_25] : memref<128x128xbf16, #tpu.memory_space<vmem>>, vector<128x128xbf16>
    %cst_26 = arith.constant dense<0.000000e+00> : vector<8x128xf32>
    %45 = tpu.matmul %43, %44, %cst_26 {dimension_numbers = #tpu.dot_dimension_numbers<[1], [0], [0], [1], [0, 0, 1, 1], [], []>} : vector<8x128xbf16>, vector<128x128xbf16>, vector<8x128xf32> -> vector<8x128xf32>
    %c0_27 = arith.constant 0 : index
    %c0_28 = arith.constant 0 : index
    %46 = vector.load %arg9[%c0_27, %c0_28] : memref<1x128xf32, #tpu.memory_space<vmem>>, vector<1x128xf32>
    %47 = vector.broadcast %46 : vector<1x128xf32> to vector<8x128xf32>
    %48 = arith.addf %45, %47 : vector<8x128xf32>
    %c0_29 = arith.constant 0 : index
    %c0_30 = arith.constant 0 : index
    %49 = vector.load %arg10[%c0_29, %c0_30] : memref<8x128xf32, #tpu.memory_space<vmem>>, vector<8x128xf32>
    tpu.vector_store %arg10[%c0_29, %c0_30], %48 {strides = array<i32>} : memref<8x128xf32, #tpu.memory_space<vmem>>, vector<8x128xf32>,
    return
  }
  func.func @transform_0(%arg0: i32) -> (i32, i32) {
    %c0_i32 = arith.constant 0 : i32
    %c0_i32_0 = arith.constant 0 : i32
    return %arg0, %c0_i32 : i32, i32
  }
  func.func @transform_1(%arg0: i32) -> (i32, i32) {
    %c0_i32 = arith.constant 0 : i32
    %c0_i32_0 = arith.constant 0 : i32
    %c0_i32_1 = arith.constant 0 : i32
    return %c0_i32, %c0_i32_0 : i32, i32
  }
  func.func @transform_2(%arg0: i32) -> (i32, i32) {
    %c0_i32 = arith.constant 0 : i32
    %c0_i32_0 = arith.constant 0 : i32
    %c0_i32_1 = arith.constant 0 : i32
    return %c0_i32, %c0_i32_0 : i32, i32
  }
  func.func @transform_3(%arg0: i32) -> (i32, i32) {
    %c0_i32 = arith.constant 0 : i32
    %c0_i32_0 = arith.constant 0 : i32
    %c0_i32_1 = arith.constant 0 : i32
    return %c0_i32, %c0_i32_0 : i32, i32
  }
  func.func @transform_4(%arg0: i32) -> (i32, i32) {
    %c0_i32 = arith.constant 0 : i32
    %c0_i32_0 = arith.constant 0 : i32
    %c0_i32_1 = arith.constant 0 : i32
    return %c0_i32, %c0_i32_0 : i32, i32
  }
  func.func @transform_5(%arg0: i32) -> (i32, i32) {
    %c0_i32 = arith.constant 0 : i32
    %c0_i32_0 = arith.constant 0 : i32
    %c0_i32_1 = arith.constant 0 : i32
    return %c0_i32, %c0_i32_0 : i32, i32
  }
  func.func @transform_6(%arg0: i32) -> (i32, i32) {
    %c0_i32 = arith.constant 0 : i32
    %c0_i32_0 = arith.constant 0 : i32
    %c0_i32_1 = arith.constant 0 : i32
    return %c0_i32, %c0_i32_0 : i32, i32
  }
  func.func @transform_7(%arg0: i32) -> (i32, i32) {
    %c0_i32 = arith.constant 0 : i32
    %c0_i32_0 = arith.constant 0 : i32
    %c0_i32_1 = arith.constant 0 : i32
    return %c0_i32, %c0_i32_0 : i32, i32
  }
  func.func @transform_8(%arg0: i32) -> (i32, i32) {
    %c0_i32 = arith.constant 0 : i32
    %c0_i32_0 = arith.constant 0 : i32
    %c0_i32_1 = arith.constant 0 : i32
    return %c0_i32, %c0_i32_0 : i32, i32
  }
  func.func @transform_9(%arg0: i32) -> (i32, i32) {
    %c0_i32 = arith.constant 0 : i32
    %c0_i32_0 = arith.constant 0 : i32
    return %arg0, %c0_i32 : i32, i32
  }
}

</mosaic_0001>

<bundles_post_ra>
// kernel: simple_dense_net_forward.1
= control target key start
LH: loop header
LB: loop body
LE: loop exit
PB: predicated region body
PF: predicated region fallthrough
CT: control target
= control target key end

     0   :  { %14 = vsyncpa [#allocation3], 0  ;;  %s1680_s0 = inlined_call_operand.hbm [shape: f32[16,64], index: 0, kind: input, shape index: {}]   ;;  %s1681_s1 = inlined_call_operand.hbm [shape: bf16[64,128], index: 1, kind: input, shape index: {}]   ;;  %s1682_s2 = inlined_call_operand.vmem [shape: f32[1,128], index: 2, kind: input, shape index: {}]   ;;  %s1683_s3 = inlined_call_operand.hbm [shape: bf16[128,128], index: 3, kind: input, shape index: {}]   ;;  %s1684_s4 = inlined_call_operand.vmem [shape: f32[1,128], index: 4, kind: input, shape index: {}]   ;;  %s1685_s5 = inlined_call_operand.hbm [shape: bf16[128,128], index: 5, kind: input, shape index: {}]   ;;  %s1686_s6 = inlined_call_operand.vmem [shape: f32[1,128], index: 6, kind: input, shape index: {}]   ;;  %s1687_s7 = inlined_call_operand.hbm [shape: bf16[128,128], index: 7, kind: input, shape index: {}]   ;;  %s1688_s8 = inlined_call_operand.vmem [shape: f32[1,128], index: 8, kind: input, shape index: {}]   ;;  %s1689_s9 = inlined_call_operand.vmem [shape: f32[16,128], index: 9, kind: output, shape index: {}]  }
   0x1   :  { %16 = vsyncpa [#allocation3 + $0x1], 0 }
   0x2   :  { %17 = vsyncpa [#allocation5], 0 }
   0x3   :  { %18 = vsyncpa [#allocation8], 0  ;;  %s1455_s30 = smov 0   ;;  %s1457_s10 = smov 0  }
   0x4   :  { %s1459_s11 = smov 0   ;;  %s1461_s12 = smov 0  }
   0x5 LB: > { %s1396_s13 = smov [#allocation4]   ;;  %s1476_s15 = sadd.s32 4294967295, %s1394_s12   ;;  %s1394_s12 = sphi %s1461_s12, %s1706_s12   ;;  %s1390_s11 = sphi %s1459_s11, %s1705_s11   ;;  %s1386_s10 = sphi %s1457_s10, %s1704_s10   ;;  %s1382_s30 = sphi %s1455_s30, %s1703_s30  }
   0x6   : > { %s261_s14 = sshll.u32 %s1396_s13, 4  ;;  %p948_p0 = scmp.ge.s32.totalorder %s1394_s12, 1  ;;  %s262_s14 = int_to_ptr.vmem [resolvable:$true] %s261_s14 }
   0x7   : > { %p1690_p1 = scmp.eq.s32.totalorder %s1476_s15, 0  ;;  %p249_p2 = scmp.lt.s32.totalorder %s1394_s12, 3 }
   0x8   : > { %s1397_s17 = smov [#allocation7]   ;;  %s1398_s20 = smov [#allocation6]  }
   0x9   : > { %p1481_p3 = pnand %p948_p0, %p249_p2  ;;  %s293_s18 = sshll.u32 %s1397_s17, 4  ;;  %s1493_s18 = int_to_ptr.vmem [resolvable:$true] %s293_s18 }
   0xa   : > { %s277_s21 = sshll.u32 %s1398_s20, 4  ;;  %s1231_s22 = scalar_lea.vmem %s262_s14, 512  ;;  %s1495_s21 = int_to_ptr.vmem [resolvable:$true] %s277_s21 }
   0xb   : > { %s1693_s16 = scalar_select %p1481_p3, 1, 0 }
   0xc   : > { %p1120_p4 = pneg %p1481_p3  ;;  %p1232_p7 = scmp.ne.s32.totalorder %s262_s14, %s1231_s22 }
   0xd   : > { %p1239_p10 = scmp.lt.s32.totalorder %s262_s14, %s262_s14  ;;  %p1240_p11 = scmp.lt.s32.totalorder %s1231_s22, %s1231_s22 }
   0xe   : > { %p1489_p5 = pnand %p1120_p4, %p1690_p1 }
   0xf   : > { %p1241_p12 = por %p1240_p11, %p1239_p10 }
  0x10   : > { %p1222_p6 = pneg %p1489_p5 }
  0x12   : > { %p1234_p8 = pnand %p1232_p7, %p1222_p6 }
  0x14   : > { %p1235_p9 = pneg %p1234_p8 }
  0x16   : > { %p1242_p13 = pnand %p1241_p12, %p1235_p9 }
  0x18   : > { %1245 = shalt.err (!%p1242_p13)
}
  0x19   : > { %s1399_s23 = smov 64   ;;  %s1400_s24 = smov 4  }
  0x1a   : > { %1123 = dma.hbm_to_vmem [thread:$0]  (!%p1489_p5), %s1681_s1, 512, %s262_s14, [#allocation5], %s1399_s23, %s1399_s23, %s1400_s24  }
  0x1b   : > { %s1257_s27 = scalar_lea.vmem %s1493_s18, 1024  ;;  %p1265_p7 = scmp.lt.s32.totalorder %s1493_s18, %s1493_s18 }
  0x1c   : > { %p1258_p0 = scmp.ne.s32.totalorder %s1493_s18, %s1257_s27  ;;  %p1266_p8 = scmp.lt.s32.totalorder %s1257_s27, %s1257_s27 }
  0x1e   : > { %p1260_p2 = pnand %p1258_p0, %p1222_p6  ;;  %p1267_p9 = por %p1266_p8, %p1265_p7 }
  0x20   : > { %p1261_p4 = pneg %p1260_p2 }
  0x22   : > { %p1268_p10 = pnand %p1267_p9, %p1261_p4 }
  0x24   : > { %1271 = shalt.err (!%p1268_p10)
}
  0x25   : > { %1129 = dma.hbm_to_vmem [thread:$0]  (!%p1489_p5), %s1685_s5, 1024, %s1493_s18, [#allocation8], %s1399_s23, %s1399_s23, %s1400_s24  }
  0x26   : > { %s1283_s13 = scalar_lea.vmem %s1495_s21, 1024  ;;  %p1291_p0 = scmp.lt.s32.totalorder %s1495_s21, %s1495_s21 }
  0x27   : > { %p1284_p11 = scmp.ne.s32.totalorder %s1495_s21, %s1283_s13  ;;  %p1292_p2 = scmp.lt.s32.totalorder %s1283_s13, %s1283_s13 }
  0x29   : > { %p1286_p12 = pnand %p1284_p11, %p1222_p6  ;;  %p1293_p4 = por %p1292_p2, %p1291_p0 }
  0x2b   : > { %p1287_p13 = pneg %p1286_p12 }
  0x2d   : > { %p1294_p7 = pnand %p1293_p4, %p1287_p13 }
  0x2f   : > { %1297 = shalt.err (!%p1294_p7)
}
  0x30   : > { %1126 = dma.hbm_to_vmem [thread:$0]  (!%p1489_p5), %s1683_s3, 1024, %s1495_s21, [#allocation5], %s1399_s23, %s1399_s23, %s1400_s24  }
  0x31   : > { %s1401_s18 = smov [#allocation9]  }
  0x32   : > { %s309_s20 = sshll.u32 %s1401_s18, 4  ;;  %s310_s20 = int_to_ptr.vmem [resolvable:$true] %s309_s20 }
  0x33   : > { %s1309_s22 = scalar_lea.vmem %s310_s20, 1024  ;;  %p1317_p11 = scmp.lt.s32.totalorder %s310_s20, %s310_s20 }
  0x34   : > { %p1310_p8 = scmp.ne.s32.totalorder %s310_s20, %s1309_s22  ;;  %p1318_p12 = scmp.lt.s32.totalorder %s1309_s22, %s1309_s22 }
  0x36   : > { %p1312_p9 = pnand %p1310_p8, %p1222_p6  ;;  %p1319_p13 = por %p1318_p12, %p1317_p11 }
  0x38   : > { %p1313_p10 = pneg %p1312_p9 }
  0x3a   : > { %p1320_p0 = pnand %p1319_p13, %p1313_p10 }
  0x3c   : > { %1323 = shalt.err (!%p1320_p0)
}
  0x3d   : > { %1132 = dma.hbm_to_vmem [thread:$0]  (!%p1489_p5), %s1687_s7, 1024, %s310_s20, [#allocation8], %s1399_s23, %s1399_s23, %s1400_s24  }
  0x3e   : > { %s1554_s19 = sadd.s32 1, %s1394_s12   ;;  %s31_s26 = sadd.s32 1, %s1390_s11 }
  0x3f   : > { %s28_s27 = ssub.s32 %s1394_s12, %s1554_s19  ;;  %p38_p6 = scmp.ne.s32.totalorder %s1390_s11, %s1386_s10 }
  0x40   : > { %p29_p2 = scmp.eq.s32.totalorder %s28_s27, 0  ;;  %p39_p4 = scmp.eq.s32.totalorder %s1394_s12, 0 }
  0x41   : > { %p44_p7 = scmp.ne.s32.totalorder %s1386_s10, %s1382_s30  ;;  %p1141_p8 = scmp.lt.s32.totalorder %s1394_s12, 2 }
  0x42   : > { %s1566_s28 = scalar_select %p29_p2, %s1390_s11, %s31_s26  }
  0x43   : > { %p40_p9 = por %p39_p4, %p38_p6  ;;  %p1570_p10 = por %p1690_p1, %p44_p7 }
  0x44   : > { %s326_s13 = sand.u32 1, %s1390_s11   ;;  %s955_s23 = sshll.u32 %s1394_s12, 7 }
  0x45   : > { %s1695_s29 = scalar_select %p1570_p10, 1, 0 }
  0x46   : > { %s954_s24 = sshll.u32 %s326_s13, 3  ;;  %s1579_s18 = scalar_lea.hbm %s1680_s0, %s955_s23 }
  0x47   : > { %s330_s30 = scalar_lea.vmem [#allocation2], %s954_s24  ;;  %p1581_p5 = pnand %p1141_p8, %p40_p9 }
  0x48   : > { %s337_s20 = sshll.u32 %s330_s30, 4  ;;  %s327_s21 = scalar_lea.sflag [#allocation3], %s326_s13  ;;  %s338_s20 = int_to_ptr.vmem [resolvable:$true] %s337_s20 }
  0x49   : > { %s1324_s25 = scalar_lea.hbm %s1579_s18, 128  ;;  %p1326_p12 = pneg %p1581_p5 }
  0x4a   : > { %p1325_p11 = scmp.ne.s32.totalorder %s1579_s18, %s1324_s25  ;;  %s1329_s27 = scalar_lea.hbm %s1680_s0, 256 }
  0x4b   : > { %p1330_p6 = scmp.lt.s32.totalorder %s1579_s18, %s1680_s0  ;;  %p1331_p2 = scmp.lt.s32.totalorder %s1329_s27, %s1324_s25 }
  0x4c   : > { %p1327_p13 = pnand %p1326_p12, %p1325_p11 }
  0x4d   : > { %p1332_p4 = por %p1331_p2, %p1330_p6 }
  0x4e   : > { %p1328_p0 = pneg %p1327_p13 }
  0x50   : > { %p1333_p7 = pnand %p1332_p4, %p1328_p0 }
  0x52   : > { %1336 = shalt.err (!%p1333_p7)
}
  0x53   : > { %s1337_s14 = scalar_lea.vmem %s338_s20, 128  ;;  %s1402_s13 = smov [#allocation2]  }
  0x54   : > { %p1338_p8 = scmp.ne.s32.totalorder %s338_s20, %s1337_s14  ;;  %s1342_s17 = sshll.u32 %s1402_s13, 4  ;;  %s1343_s17 = int_to_ptr.vmem [resolvable:$false] %s1342_s17 }
  0x55   : > { %s1344_s30 = scalar_lea.vmem %s1343_s17, 256  ;;  %p1345_p11 = scmp.lt.s32.totalorder %s338_s20, %s1343_s17 }
  0x56   : > { %p1340_p9 = pnand %p1338_p8, %p1326_p12  ;;  %p1346_p13 = scmp.lt.s32.totalorder %s1344_s30, %s1337_s14 }
  0x58   : > { %p1341_p1 = pneg %p1340_p9  ;;  %p1347_p10 = por %p1346_p13, %p1345_p11 }
  0x5a   : > { %p1348_p3 = pnand %p1347_p10, %p1341_p1 }
  0x5c   : > { %1351 = shalt.err (!%p1348_p3)
}
  0x5d   : > { %1136 = dma.hbm_to_vmem [thread:$0]  (!%p1581_p5), %s1579_s18, 128, %s338_s20, %s327_s21  }
  0x5e   : > { %p1697_p0 = scmp.ne.s32.totalorder %s1693_s16, 0 }
  0x5f   : > { %s348_s25 = sand.u32 (!%p1697_p0), 1, %s1386_s10   ;;  %p1698_p12 = scmp.ne.s32.totalorder (!%p1697_p0), %s1695_s29, 0 }
  0x60   : > { %346 = sbr.rel (%p1697_p0) target bundleno = 976 (0x3d0), region = 56  ;;  %s957_s12 = sshll.u32 (!%p1697_p0), %s348_s25, 3 }
  0x61   : > { %s349_s26 = scalar_lea.sflag (!%p1697_p0), [#allocation3], %s348_s25  ;;  %s352_s27 = scalar_lea.vmem (!%p1697_p0), [#allocation2], %s957_s12 }
  0x65   : > { %1369 = dma.done.wait (%p1698_p12), %s349_s26, 128  }
  0x66   : > { %1371 = vsyncadd (%p1698_p12), %s349_s26, 4294967168  ;;  %p1699_p1 = scmp.eq.s32.totalorder %s1476_s15, 0 }
  0x68   : > { %1373 = dma.done.wait (%p1699_p1), [#allocation5], 1536   ;;  %p1700_p3 = pmov %p1699_p1 }
  0x69   : > { %p1701_p10 = pmov %p1699_p1 }
  0x6a   : > { %1375 = vsyncadd (%p1700_p3), [#allocation5], 4294965760 }
  0x6b   : > { %1377 = dma.done.wait (%p1701_p10), [#allocation8], 2048   ;;  %p1702_p5 = pmov %p1699_p1 }
  0x6c   : > { %v1403_v0 = vmov 0.0   ;;  %vm1404_vm0 = vmmov 0   ;;  %v1186_v1 = vld [vmem:[#allocation4 + $0x18] sm:$0xff]   ;;  %v1187_v2 = vld [vmem:[#allocation4 + $0x10] sm:$0xff]   ;;  %v1188_v4 = vld [vmem:[#allocation4 + $0x8] sm:$0xff]   ;;  %vm448_vm1 = vcmask 523264  }
  0x6d   : > { %1379 = vsyncadd (%p1702_p5), [#allocation8], 4294965248  ;;  %1030 = vmatprep.subr.bf16.mxu0 %v1403_v0  ;;  %1038 = vmatprep.mubr.msk.bf16.mxu0 %vm1404_vm0, %v1403_v0  ;;  %v1190_v3 = vld [vmem:[#allocation6 + $0x38] sm:$0xff]   ;;  %v1191_v5 = vld [vmem:[#allocation6 + $0x30] sm:$0xff]   ;;  %p402_p6 = scmp.lt.s32.totalorder %s1476_s15, 1 }
  0x6e   : > { %1042 = vmatprep.subr.bf16.mxu1 %v1403_v0  ;;  %1058 = vmatprep.mubr.msk.bf16.mxu1 %vm1404_vm0, %v1403_v0  ;;  %v1189_v6 = vld [vmem:[#allocation4] sm:$0xff]   ;;  %v407_v7 = vld [vmem:[%s352_s27] sm:$0xff]  ;;  %v1192_v9 = vld [vmem:[#allocation6 + $0x28] sm:$0xff]  }
  0x6f   : > { %1031 = vmatpush3.bf16.msra.mxu0 %v1186_v1  ;;  %1043 = vmatpush3.bf16.msra.mxu1 %v1190_v3  ;;  %v408_v8 = vpack.c.bf16 %v407_v7, %v407_v7  ;;  %v1193_v10 = vld [vmem:[#allocation6 + $0x20] sm:$0xff]   ;;  %v1194_v11 = vld [vmem:[#allocation6 + $0x18] sm:$0xff]   ;;  %v1195_v12 = vld [vmem:[#allocation6 + $0x10] sm:$0xff]   ;;  %s1708_s15 = smov (!%p402_p6, %s1476_s15), 1 }
  0x70   : > { %1032 = vmatprep.subr.bf16.mxu0 %v1403_v0  ;;  %1044 = vmatprep.subr.bf16.mxu1 %v1403_v0  ;;  %v1196_v13 = vld [vmem:[#allocation6 + $0x8] sm:$0xff]   ;;  %v1197_v14 = vld [vmem:[#allocation6] sm:$0xff]   ;;  %v1198_v15 = vld [vmem:[#allocation7 + $0x38] sm:$0xff]   ;;  %s962_s23 = sshll.u32 %s1708_s15, 3 }
  0x71   : > { %v1199_v16 = vld [vmem:[#allocation7 + $0x30] sm:$0xff]   ;;  %v1200_v29 = vld [vmem:[#allocation7 + $0x28] sm:$0xff]   ;;  %v1201_v30 = vld [vmem:[#allocation7 + $0x20] sm:$0xff]   ;;  %s405_s30 = scalar_lea.vmem %s1689_s9, %s962_s23 }
  0x72   : > { %v963_v17 = vld [vmem:[%s1682_s2] ss:$0 sm:$0xff]  ;;  %v1202_v31 = vld [vmem:[#allocation7 + $0x18] sm:$0xff]   ;;  %v1204_v33 = vld [vmem:[#allocation7 + $0x8] sm:$0xff]  }
  0x73   : > { %1033 = vmatpush3.bf16.msra.mxu0 %v1187_v2  ;;  %1045 = vmatpush3.bf16.msra.mxu1 %v1191_v5  ;;  %v1203_v32 = vld [vmem:[#allocation7 + $0x10] sm:$0xff]   ;;  %v1205_v34 = vld [vmem:[#allocation7] sm:$0xff]   ;;  %v1206_v35 = vld [vmem:[#allocation9 + $0x38] sm:$0xff]  }
  0x74   : > { %1034 = vmatprep.subr.bf16.mxu0 %v1403_v0  ;;  %1046 = vmatprep.subr.bf16.mxu1 %v1403_v0  ;;  %v1207_v36 = vld [vmem:[#allocation9 + $0x30] sm:$0xff]   ;;  %v1208_v49 = vld [vmem:[#allocation9 + $0x28] sm:$0xff]   ;;  %v1209_v50 = vld [vmem:[#allocation9 + $0x20] sm:$0xff]  }
  0x75   : > { %v969_v37 = vld [vmem:[%s1684_s4] ss:$0 sm:$0xff]  ;;  %v1210_v51 = vld [vmem:[#allocation9 + $0x18] sm:$0xff]   ;;  %v1212_v53 = vld [vmem:[#allocation9 + $0x8] sm:$0xff]  }
  0x76   : > { %v1211_v52 = vld [vmem:[#allocation9 + $0x10] sm:$0xff]   ;;  %v1213_v54 = vld [vmem:[#allocation9] sm:$0xff]  }
  0x77   : > { %1035 = vmatpush3.bf16.msra.mxu0 %v1188_v4  ;;  %1047 = vmatpush3.bf16.msra.mxu1 %v1192_v9  ;;  %v978_v55 = vld [vmem:[%s1686_s6] ss:$0 sm:$0xff] }
  0x78   : > { %1036 = vmatprep.subr.bf16.mxu0 %v1403_v0  ;;  %1048 = vmatprep.subr.bf16.mxu1 %v1403_v0  ;;  %v987_v3 = vld [vmem:[%s1688_s8] ss:$0 sm:$0xff] }
  0x7b   : > { %1037 = vmatpush3.bf16.msra.mxu0 %v1189_v6  ;;  %1049 = vmatpush3.bf16.msra.mxu1 %v1193_v10 }
  0x7c   : > { %1062 = vmatprep.subr.bf16.mxu0 %v1403_v0  ;;  %1050 = vmatprep.subr.bf16.mxu1 %v1403_v0 }
  0x7e   : > { %1039 = vmatmul.mubr.msk.bf16.vlgmr.msra.gmra.mxu0 %vm448_vm1, %v408_v8 }
  0x7f   : > { %1078 = vmatprep.mubr.msk.bf16.mxu0 %vm1404_vm0, %v1403_v0  ;;  %1051 = vmatpush3.bf16.msra.mxu1 %v1194_v11 }
  0x80   : > { %1052 = vmatprep.subr.bf16.mxu1 %v1403_v0  ;;  %1063 = vmatpush3.bf16.msra.mxu0 %v1198_v15 }
  0x81   : > { %1064 = vmatprep.subr.bf16.mxu0 %v1403_v0 }
  0x83   : > { %1053 = vmatpush3.bf16.msra.mxu1 %v1195_v12 }
  0x84   : > { %1054 = vmatprep.subr.bf16.mxu1 %v1403_v0  ;;  %1065 = vmatpush3.bf16.msra.mxu0 %v1199_v16 }
  0x85   : > { %1066 = vmatprep.subr.bf16.mxu0 %v1403_v0 }
  0x87   : > { %1055 = vmatpush3.bf16.msra.mxu1 %v1196_v13 }
  0x88   : > { %1056 = vmatprep.subr.bf16.mxu1 %v1403_v0  ;;  %1067 = vmatpush3.bf16.msra.mxu0 %v1200_v29 }
  0x89   : > { %1068 = vmatprep.subr.bf16.mxu0 %v1403_v0 }
  0x8b   : > { %1057 = vmatpush3.bf16.msra.mxu1 %v1197_v14 }
  0x8c   : > { %1082 = vmatprep.subr.bf16.mxu1 %v1403_v0  ;;  %1069 = vmatpush3.bf16.msra.mxu0 %v1201_v30 }
  0x8d   : > { %1070 = vmatprep.subr.bf16.mxu0 %v1403_v0 }
  0x90   : > { %1071 = vmatpush3.bf16.msra.mxu0 %v1202_v31 }
  0x91   : > { %1072 = vmatprep.subr.bf16.mxu0 %v1403_v0 }
  0x94   : > { %1073 = vmatpush3.bf16.msra.mxu0 %v1203_v32 }
  0x95   : > { %1074 = vmatprep.subr.bf16.mxu0 %v1403_v0 }
  0x98   : > { %1075 = vmatpush3.bf16.msra.mxu0 %v1204_v33 }
  0x99   : > { %1076 = vmatprep.subr.bf16.mxu0 %v1403_v0 }
  0x9c   : > { %1077 = vmatpush3.bf16.msra.mxu0 %v1205_v34 }
 0x13e   : > { %v486_v18 = vpop.f32.mrf.mxu0 }
 0x13f   : > { %v487_v19 = vadd.f32 %v963_v17, %v486_v18 }
 0x140   : > { %v1040_v20 = vpop.f32.mrf.mxu0 }
 0x141   : > { %v493_v21 = vmul.f32 0.70710677, %v487_v19  ;;  %v492_v25 = vmul.f32 0.5, %v487_v19 }
 0x142   : > { %v489_v22 = vpop.f32.mrf.mxu0 }
 0x143   : > { %1214 = verf.f32 %v493_v21 }
 0x144   : > { %v1041_v23 = vpop.f32.mrf.mxu0 }
 0x150   : > { %v1215_v24 = vpop.eup %1214 }
 0x151   : > { %v495_v26 = vadd.f32 1.0, %v1215_v24 }
 0x153   : > { %v496_v27 = vmul.f32 %v495_v26, %v492_v25 }
 0x155   : > { %v497_v28 = vpack.c.bf16 %v496_v27, %v496_v27 }
 0x157   : > { %1059 = vmatmul.mubr.bf16.vlgmr.msra.gmra.mxu1 %v497_v28 }
 0x158   : > { %1098 = vmatprep.mubr.msk.bf16.mxu1 %vm1404_vm0, %v1403_v0  ;;  %1083 = vmatpush3.bf16.msra.mxu1 %v1206_v35 }
 0x159   : > { %1084 = vmatprep.subr.bf16.mxu1 %v1403_v0 }
 0x15c   : > { %1085 = vmatpush3.bf16.msra.mxu1 %v1207_v36 }
 0x15d   : > { %1086 = vmatprep.subr.bf16.mxu1 %v1403_v0 }
 0x160   : > { %1087 = vmatpush3.bf16.msra.mxu1 %v1208_v49 }
 0x161   : > { %1088 = vmatprep.subr.bf16.mxu1 %v1403_v0 }
 0x164   : > { %1089 = vmatpush3.bf16.msra.mxu1 %v1209_v50 }
 0x165   : > { %1090 = vmatprep.subr.bf16.mxu1 %v1403_v0 }
 0x168   : > { %1091 = vmatpush3.bf16.msra.mxu1 %v1210_v51 }
 0x169   : > { %1092 = vmatprep.subr.bf16.mxu1 %v1403_v0 }
 0x16c   : > { %1093 = vmatpush3.bf16.msra.mxu1 %v1211_v52 }
 0x16d   : > { %1094 = vmatprep.subr.bf16.mxu1 %v1403_v0 }
 0x170   : > { %1095 = vmatpush3.bf16.msra.mxu1 %v1212_v53 }
 0x171   : > { %1096 = vmatprep.subr.bf16.mxu1 %v1403_v0 }
 0x174   : > { %1097 = vmatpush3.bf16.msra.mxu1 %v1213_v54 }
 0x217   : > { %v603_v38 = vpop.f32.mrf.mxu1 }
 0x218   : > { %v604_v39 = vadd.f32 %v969_v37, %v603_v38 }
 0x219   : > { %v1060_v40 = vpop.f32.mrf.mxu1 }
 0x21a   : > { %v610_v41 = vmul.f32 0.70710677, %v604_v39  ;;  %v609_v45 = vmul.f32 0.5, %v604_v39 }
 0x21b   : > { %v606_v42 = vpop.f32.mrf.mxu1 }
 0x21c   : > { %1216 = verf.f32 %v610_v41 }
 0x21d   : > { %v1061_v43 = vpop.f32.mrf.mxu1 }
 0x229   : > { %v1217_v44 = vpop.eup %1216 }
 0x22a   : > { %v612_v46 = vadd.f32 1.0, %v1217_v44 }
 0x22c   : > { %v613_v47 = vmul.f32 %v612_v46, %v609_v45 }
 0x22e   : > { %v614_v48 = vpack.c.bf16 %v613_v47, %v613_v47 }
 0x230   : > { %1079 = vmatmul.mubr.bf16.vlgmr.msra.gmra.mxu0 %v614_v48 }
 0x2f0   : > { %v720_v56 = vpop.f32.mrf.mxu0 }
 0x2f1   : > { %v721_v57 = vadd.f32 %v978_v55, %v720_v56 }
 0x2f2   : > { %v1080_v58 = vpop.f32.mrf.mxu0 }
 0x2f3   : > { %v727_v59 = vmul.f32 0.70710677, %v721_v57  ;;  %v726_v63 = vmul.f32 0.5, %v721_v57 }
 0x2f4   : > { %v723_v60 = vpop.f32.mrf.mxu0 }
 0x2f5   : > { %1218 = verf.f32 %v727_v59 }
 0x2f6   : > { %v1081_v61 = vpop.f32.mrf.mxu0 }
 0x302   : > { %v1219_v62 = vpop.eup %1218 }
 0x303   : > { %v729_v1 = vadd.f32 1.0, %v1219_v62 }
 0x305   : > { %v730_v2 = vmul.f32 %v729_v1, %v726_v63 }
 0x307   : > { %v731_v0 = vpack.c.bf16 %v730_v2, %v730_v2 }
 0x309   : > { %1099 = vmatmul.mubr.bf16.vlgmr.msra.gmra.mxu1 %v731_v0 }
 0x3c9   : > { %v837_v4 = vpop.f32.mrf.mxu1 }
 0x3ca   : > { %v838_v5 = vadd.f32 %v987_v3, %v837_v4 }
 0x3cb   : > { %v1100_v6 = vpop.f32.mrf.mxu1 }
 0x3cc   : > { %843 = vst [vmem:[%s405_s30] sm:$0xff] %v838_v5 }
 0x3cd   : > { %v840_v7 = vpop.f32.mrf.mxu1 }
 0x3cf   : > { %v1101_v8 = vpop.f32.mrf.mxu1 }
 0x3d0 PF: > { %p21_p2 = scmp.ge.s32.totalorder %s1554_s19, 4   ;;  %s1703_s30 = smov %s1386_s10 }
 0x3d1   : > { %s1704_s10 = smov %s1390_s11  ;;  %s1705_s11 = smov %s1566_s28 }
 0x3d2   : > { %s1706_s12 = smov %s1554_s19  ;;  %23 = sbr.rel (!%p21_p2) target bundleno = 5 (0x5), region = 112 }
 0x3d7   :  { %863 = vsyncpa [#allocation3], 1 }
 0x3d8   :  { %865 = vsyncpa [#allocation3 + $0x1], 1 }
 0x3d9   :  { %866 = vsyncpa [#allocation5], 1 }
 0x3da   :  { %867 = vsyncpa [#allocation8], 1 }

</bundles_post_ra>
